<compile_context>
chip_gen: v6e
topology: v6e:2x2x1
jax: 0.10.0
libtpu: 0.0.40
codegen_flags: <defaults>
</compile_context>

<pallas_src>
import functools

import jax
import jax.numpy as jnp
from jax import lax
from jax.experimental import pallas as pl
from jax.experimental.pallas import tpu as pltpu

_LANES = 128
_PER_BLOCK_BYTES = 1 << 20   # ~1 MiB per input block per pipeline buffer


@functools.lru_cache(maxsize=None)
def _tensorcores_per_device():
    """TensorCores per device: 2 on megacore / v7x chips, else 1."""
    try:
        kind = jax.devices()[0].device_kind.lower()
    except Exception:
        return 1
    for tag in ("v4", "v5p", "v7", "7x"):
        if tag in kind:
            return 2
    return 1


@functools.lru_cache(maxsize=None)
def _bf16_transcendentals_ok():
    """Run exp/log1p in bf16 only on v6e / v7x (v5e EUP has no bf16)."""
    try:
        kind = jax.devices()[0].device_kind.lower()
    except Exception:
        return False
    return ("v6" in kind) or ("v7" in kind) or ("7x" in kind)


def _cel_kernel(tgt_ref, d1_ref, d2_ref, d3_ref, d4_ref, d5_ref, out_ref, *,
                tile_rows, tiles_per_core, total_rows, block_cols,
                needs_tail, bf16_trans):
    core = pl.program_id(0)   # "parallel": split across TensorCores (v7x etc.)
    step = pl.program_id(1)   # "arbitrary": reduction over row tiles

    @pl.when(step == 0)
    def _init():
        out_ref[...] = jnp.zeros_like(out_ref)

    pred_refs = (d1_ref, d2_ref, d3_ref, d4_ref, d5_ref)
    tile = core * tiles_per_core + step   # logical (unclamped) tile index

    def accumulate(masked):
        z = tgt_ref[...].astype(jnp.float32)
        if masked:
            row_ids = lax.broadcasted_iota(jnp.int32, (tile_rows, block_cols), 0)
            valid = (tile * tile_rows + row_ids) < total_rows
        partials = []
        for x_ref in pred_refs:
            if bf16_trans and x_ref.dtype == jnp.bfloat16:
                # exp / log1p in bf16 on the EUP; accumulate in f32.
                xb = x_ref[...]
                softplus = jnp.log1p(jnp.exp(-jnp.abs(xb))).astype(jnp.float32)
                x = xb.astype(jnp.float32)
            else:
                x = x_ref[...].astype(jnp.float32)
                softplus = jnp.log1p(jnp.exp(-jnp.abs(x)))
            # Numerically stable BCE-with-logits: max(x,0) - x*z + log1p(exp(-|x|))
            bce = jnp.maximum(x, 0.0) - x * z + softplus
            if masked:
                bce = jnp.where(valid, bce, 0.0)
            # Lane-wise partial sums only; cross-lane reduce happens in wrapper.
            partials.append(jnp.sum(bce, axis=0, keepdims=True))  # (1, block_cols)
        contrib = jnp.concatenate(
            partials + [jnp.zeros((3, block_cols), jnp.float32)], axis=0)  # (8, cols)
        out_ref[...] += contrib

    if not needs_tail:
        # Static fast path: tiles exactly cover the rows, no masking ever.
        accumulate(False)
    else:
        is_tail = (tile + 1) * tile_rows > total_rows

        @pl.when(jnp.logical_not(is_tail))
        def _fast():
            accumulate(False)

        @pl.when(is_tail)
        def _masked():
            accumulate(True)


def cel_loss(pred, masks, *, force_split=None):
    """Pallas equivalent of CEL.forward.

    pred  : tuple (output, out5, out4, out3, out2), each (b, 1, h, w) logits
    masks : (b, C, h, w); target = masks[:, 0:1, :, :]
    returns dict of scalar losses D1..D5 (mean BCE-with-logits).
    """
    output, out5, out4, out3, out2 = pred
    target = masks[:, 0:1, :, :]
    b, c, h, w = target.shape
    n_elem = b * c * h * w
    rows = b * c * h
    cols = w

    def to_slab(x):
        # Free contiguous reshape; keeps the incoming dtype (bf16 stays bf16).
        return x.reshape(rows, cols)

    # Row order matches loss naming: D1<-output, D2<-out2, ..., D5<-out5.
    slabs = [to_slab(v) for v in (output, out2, out3, out4, out5)]
    tgt = to_slab(target)

    # Row-tile size from a ~1 MiB per-block VMEM budget (6 inputs, double
    # buffered => ~12 MiB) so it fits every generation's VMEM comfortably.
    lanes_padded = pl.cdiv(cols, _LANES) * _LANES
    max_itemsize = max(a.dtype.itemsize for a in (tgt, *slabs))
    cap = max(8, (_PER_BLOCK_BYTES // (lanes_padded * max_itemsize)) // 8 * 8)
    tile_rows = rows if rows <= cap else cap   # full dim or multiple of 8

    num_tiles = pl.cdiv(rows, tile_rows)
    n_cores = force_split if force_split is not None else _tensorcores_per_device()
    n_split = max(1, min(int(n_cores), num_tiles))
    tiles_per_core = pl.cdiv(num_tiles, n_split)
    covered_rows = n_split * tiles_per_core * tile_rows
    needs_tail = covered_rows != rows

    def in_map(ci, ti):
        # Clamp so over-split cores never DMA past the last block; the
        # in-kernel tail mask zeroes duplicated / out-of-range rows.
        return (jnp.minimum(ci * tiles_per_core + ti, num_tiles - 1), 0)

    def out_map(ci, ti):
        return (ci, 0)

    kernel = functools.partial(
        _cel_kernel,
        tile_rows=tile_rows,
        tiles_per_core=tiles_per_core,
        total_rows=rows,
        block_cols=cols,
        needs_tail=needs_tail,
        bf16_trans=_bf16_transcendentals_ok(),
    )

    out = pl.pallas_call(
        kernel,
        out_shape=jax.ShapeDtypeStruct((n_split * 8, cols), jnp.float32),
        grid_spec=pltpu.PrefetchScalarGridSpec(
            num_scalar_prefetch=0,
            grid=(n_split, tiles_per_core),
            in_specs=[pl.BlockSpec((tile_rows, cols), in_map) for _ in range(6)],
            out_specs=pl.BlockSpec((8, cols), out_map),
        ),
        compiler_params=pltpu.CompilerParams(
            dimension_semantics=("parallel", "arbitrary"),
            vmem_limit_bytes=32 * 1024 * 1024),
    )(tgt, *slabs)

    # Tiny cross-lane + cross-core reduce + divide-by-N in the wrapper.
    per_lane = out.reshape(n_split, 8, cols)[:, :5, :]   # (n_split, 5, cols)
    sums = jnp.sum(per_lane, axis=(0, 2))                # (5,)
    means = sums / jnp.float32(n_elem)
    return {'D1': means[0], 'D2': means[1], 'D3': means[2],
            'D4': means[3], 'D5': means[4]}


def _ref_bce_mean(x, z):
    x = x.astype(jnp.float32)
    z = z.astype(jnp.float32)
    return jnp.mean(jnp.maximum(x, 0.0) - x * z + jnp.log1p(jnp.exp(-jnp.abs(x))))


if __name__ == "__main__":
    key = jax.random.PRNGKey(0)

    def run_case(b, h, w, C, kbase, dtype=jnp.float32, force_split=None,
                 rtol=1e-5, atol=1e-6):
        ks = jax.random.split(kbase, 6)
        # pred tuple order per the PyTorch module: (output, out5, out4, out3, out2)
        preds = tuple(jax.random.normal(ks[i], (b, 1, h, w), jnp.float32).astype(dtype)
                      for i in range(5))
        output, out5, out4, out3, out2 = preds
        masks = (jax.random.uniform(ks[5], (b, C, h, w), jnp.float32) > 0.5
                 ).astype(dtype)

        if force_split is None:
            fn = jax.jit(cel_loss)
        else:
            fn = jax.jit(functools.partial(cel_loss, force_split=force_split))
        losses = fn(preds, masks)
        jax.block_until_ready(losses)

        target = masks[:, 0:1, :, :]
        ref = {
            'D1': _ref_bce_mean(output, target),
            'D2': _ref_bce_mean(out2, target),
            'D3': _ref_bce_mean(out3, target),
            'D4': _ref_bce_mean(out4, target),
            'D5': _ref_bce_mean(out5, target),
        }
        for name in ('D1', 'D2', 'D3', 'D4', 'D5'):
            assert jnp.allclose(losses[name], ref[name], rtol=rtol, atol=atol), (
                (b, h, w, C, str(dtype), force_split), name,
                losses[name], ref[name])

    k1, k2, k3, k4, k5 = jax.random.split(key, 5)
    # Small: single tile, no masking, no core split.
    run_case(2, 16, 16, 3, k1)
    # Lane width not a multiple of 128 (no pad copy), single tile.
    run_case(1, 300, 300, 3, k2)
    # Multi-tile with partial tail tile (row mask under pl.when).
    run_case(1, 3000, 40, 2, k3)
    # Forced 2-way core split with an odd tile count: duplicate clamped tile
    # must be fully zeroed by the tail mask.
    run_case(1, 4600, 24, 3, k4, force_split=2)
    # bf16 inputs (bf16 transcendental chain on v6e/v7x), loose tolerance.
    run_case(1, 300, 300, 3, k5, dtype=jnp.bfloat16, rtol=3e-2, atol=3e-3)

    print("KERNEL_OK")
</pallas_src>

<mosaic_0001>
module attributes {stable_mosaic.version = 11 : i64} {
  func.func @_cel_kernel(%arg0: i32, %arg1: i32, %arg2: memref<32x16xf32, #tpu.memory_space<vmem>>, %arg3: memref<32x16xf32, #tpu.memory_space<vmem>>, %arg4: memref<32x16xf32, #tpu.memory_space<vmem>>, %arg5: memref<32x16xf32, #tpu.memory_space<vmem>>, %arg6: memref<32x16xf32, #tpu.memory_space<vmem>>, %arg7: memref<32x16xf32, #tpu.memory_space<vmem>>, %arg8: memref<8x16xf32, #tpu.memory_space<vmem>>) attributes {dimension_semantics = [#tpu.dimension_semantics<parallel>, #tpu.dimension_semantics<arbitrary>], iteration_bounds = array<i64: 1, 1>, scalar_prefetch = 0 : i64, scratch_operands = 0 : i64, tpu.core_type = #tpu.core_type<tc>, window_params = [{transform_indices = @transform_0, window_bounds = array<i64: 32, 16>}, {transform_indices = @transform_1, window_bounds = array<i64: 32, 16>}, {transform_indices = @transform_2, window_bounds = array<i64: 32, 16>}, {transform_indices = @transform_3, window_bounds = array<i64: 32, 16>}, {transform_indices = @transform_4, window_bounds = array<i64: 32, 16>}, {transform_indices = @transform_5, window_bounds = array<i64: 32, 16>}, {transform_indices = @transform_6, window_bounds = array<i64: 8, 16>}]} {
    %c0_i32 = arith.constant 0 : i32
    %0 = arith.cmpi eq, %arg1, %c0_i32 : i32
    %1 = arith.extui %0 : i1 to i32
    %c0_i32_0 = arith.constant 0 : i32
    %2 = arith.cmpi ne, %1, %c0_i32_0 : i32
    scf.if %2 {
      %cst_31 = arith.constant 0.000000e+00 : f32
      %74 = vector.broadcast %cst_31 : f32 to vector<8x16xf32>
      %c0_32 = arith.constant 0 : index
      %c0_33 = arith.constant 0 : index
      %75 = vector.load %arg8[%c0_32, %c0_33] : memref<8x16xf32, #tpu.memory_space<vmem>>, vector<8x16xf32>
      tpu.vector_store %arg8[%c0_32, %c0_33], %74 {strides = array<i32>} : memref<8x16xf32, #tpu.memory_space<vmem>>, vector<8x16xf32>,
    } else {
    }
    %c0 = arith.constant 0 : index
    %c0_1 = arith.constant 0 : index
    %3 = vector.load %arg2[%c0, %c0_1] : memref<32x16xf32, #tpu.memory_space<vmem>>, vector<32x16xf32>
    %c0_2 = arith.constant 0 : index
    %c0_3 = arith.constant 0 : index
    %4 = vector.load %arg3[%c0_2, %c0_3] : memref<32x16xf32, #tpu.memory_space<vmem>>, vector<32x16xf32>
    %5 = math.absf %4 : vector<32x16xf32>
    %cst = arith.constant 0.000000e+00 : f32
    %6 = vector.broadcast %cst : f32 to vector<32x16xf32>
    %7 = arith.subf %6, %5 : vector<32x16xf32>
    %8 = math.exp %7 : vector<32x16xf32>
    %9 = math.log1p %8 : vector<32x16xf32>
    %cst_4 = arith.constant 0.000000e+00 : f32
    %10 = vector.broadcast %cst_4 : f32 to vector<32x16xf32>
    %11 = arith.maximumf %4, %10 : vector<32x16xf32>
    %12 = arith.mulf %4, %3 : vector<32x16xf32>
    %13 = arith.subf %11, %12 : vector<32x16xf32>
    %14 = arith.addf %13, %9 : vector<32x16xf32>
    %cst_5 = arith.constant dense<0.000000e+00> : vector<16xf32>
    %15 = vector.multi_reduction <add>, %14, %cst_5 [0] : vector<32x16xf32> to vector<16xf32>
    %16 = vector.shape_cast %15 : vector<16xf32> to vector<1x16xf32>
    %c0_6 = arith.constant 0 : index
    %c0_7 = arith.constant 0 : index
    %17 = vector.load %arg4[%c0_6, %c0_7] : memref<32x16xf32, #tpu.memory_space<vmem>>, vector<32x16xf32>
    %18 = math.absf %17 : vector<32x16xf32>
    %cst_8 = arith.constant 0.000000e+00 : f32
    %19 = vector.broadcast %cst_8 : f32 to vector<32x16xf32>
    %20 = arith.subf %19, %18 : vector<32x16xf32>
    %21 = math.exp %20 : vector<32x16xf32>
    %22 = math.log1p %21 : vector<32x16xf32>
    %cst_9 = arith.constant 0.000000e+00 : f32
    %23 = vector.broadcast %cst_9 : f32 to vector<32x16xf32>
    %24 = arith.maximumf %17, %23 : vector<32x16xf32>
    %25 = arith.mulf %17, %3 : vector<32x16xf32>
    %26 = arith.subf %24, %25 : vector<32x16xf32>
    %27 = arith.addf %26, %22 : vector<32x16xf32>
    %cst_10 = arith.constant dense<0.000000e+00> : vector<16xf32>
    %28 = vector.multi_reduction <add>, %27, %cst_10 [0] : vector<32x16xf32> to vector<16xf32>
    %29 = vector.shape_cast %28 : vector<16xf32> to vector<1x16xf32>
    %c0_11 = arith.constant 0 : index
    %c0_12 = arith.constant 0 : index
    %30 = vector.load %arg5[%c0_11, %c0_12] : memref<32x16xf32, #tpu.memory_space<vmem>>, vector<32x16xf32>
    %31 = math.absf %30 : vector<32x16xf32>
    %cst_13 = arith.constant 0.000000e+00 : f32
    %32 = vector.broadcast %cst_13 : f32 to vector<32x16xf32>
    %33 = arith.subf %32, %31 : vector<32x16xf32>
    %34 = math.exp %33 : vector<32x16xf32>
    %35 = math.log1p %34 : vector<32x16xf32>
    %cst_14 = arith.constant 0.000000e+00 : f32
    %36 = vector.broadcast %cst_14 : f32 to vector<32x16xf32>
    %37 = arith.maximumf %30, %36 : vector<32x16xf32>
    %38 = arith.mulf %30, %3 : vector<32x16xf32>
    %39 = arith.subf %37, %38 : vector<32x16xf32>
    %40 = arith.addf %39, %35 : vector<32x16xf32>
    %cst_15 = arith.constant dense<0.000000e+00> : vector<16xf32>
    %41 = vector.multi_reduction <add>, %40, %cst_15 [0] : vector<32x16xf32> to vector<16xf32>
    %42 = vector.shape_cast %41 : vector<16xf32> to vector<1x16xf32>
    %c0_16 = arith.constant 0 : index
    %c0_17 = arith.constant 0 : index
    %43 = vector.load %arg6[%c0_16, %c0_17] : memref<32x16xf32, #tpu.memory_space<vmem>>, vector<32x16xf32>
    %44 = math.absf %43 : vector<32x16xf32>
    %cst_18 = arith.constant 0.000000e+00 : f32
    %45 = vector.broadcast %cst_18 : f32 to vector<32x16xf32>
    %46 = arith.subf %45, %44 : vector<32x16xf32>
    %47 = math.exp %46 : vector<32x16xf32>
    %48 = math.log1p %47 : vector<32x16xf32>
    %cst_19 = arith.constant 0.000000e+00 : f32
    %49 = vector.broadcast %cst_19 : f32 to vector<32x16xf32>
    %50 = arith.maximumf %43, %49 : vector<32x16xf32>
    %51 = arith.mulf %43, %3 : vector<32x16xf32>
    %52 = arith.subf %50, %51 : vector<32x16xf32>
    %53 = arith.addf %52, %48 : vector<32x16xf32>
    %cst_20 = arith.constant dense<0.000000e+00> : vector<16xf32>
    %54 = vector.multi_reduction <add>, %53, %cst_20 [0] : vector<32x16xf32> to vector<16xf32>
    %55 = vector.shape_cast %54 : vector<16xf32> to vector<1x16xf32>
    %c0_21 = arith.constant 0 : index
    %c0_22 = arith.constant 0 : index
    %56 = vector.load %arg7[%c0_21, %c0_22] : memref<32x16xf32, #tpu.memory_space<vmem>>, vector<32x16xf32>
    %57 = math.absf %56 : vector<32x16xf32>
    %cst_23 = arith.constant 0.000000e+00 : f32
    %58 = vector.broadcast %cst_23 : f32 to vector<32x16xf32>
    %59 = arith.subf %58, %57 : vector<32x16xf32>
    %60 = math.exp %59 : vector<32x16xf32>
    %61 = math.log1p %60 : vector<32x16xf32>
    %cst_24 = arith.constant 0.000000e+00 : f32
    %62 = vector.broadcast %cst_24 : f32 to vector<32x16xf32>
    %63 = arith.maximumf %56, %62 : vector<32x16xf32>
    %64 = arith.mulf %56, %3 : vector<32x16xf32>
    %65 = arith.subf %63, %64 : vector<32x16xf32>
    %66 = arith.addf %65, %61 : vector<32x16xf32>
    %cst_25 = arith.constant dense<0.000000e+00> : vector<16xf32>
    %67 = vector.multi_reduction <add>, %66, %cst_25 [0] : vector<32x16xf32> to vector<16xf32>
    %68 = vector.shape_cast %67 : vector<16xf32> to vector<1x16xf32>
    %cst_26 = arith.constant 0.000000e+00 : f32
    %69 = vector.broadcast %cst_26 : f32 to vector<3x16xf32>
    %70 = tpu.concatenate %16, %29, %42, %55, %68, %69 in 0 : vector<1x16xf32>, vector<1x16xf32>, vector<1x16xf32>, vector<1x16xf32>, vector<1x16xf32>, vector<3x16xf32> -> vector<8x16xf32>
    %c0_27 = arith.constant 0 : index
    %c0_28 = arith.constant 0 : index
    %71 = vector.load %arg8[%c0_27, %c0_28] : memref<8x16xf32, #tpu.memory_space<vmem>>, vector<8x16xf32>
    %72 = arith.addf %71, %70 : vector<8x16xf32>
    %c0_29 = arith.constant 0 : index
    %c0_30 = arith.constant 0 : index
    %73 = vector.load %arg8[%c0_29, %c0_30] : memref<8x16xf32, #tpu.memory_space<vmem>>, vector<8x16xf32>
    tpu.vector_store %arg8[%c0_29, %c0_30], %72 {strides = array<i32>} : memref<8x16xf32, #tpu.memory_space<vmem>>, vector<8x16xf32>,
    return
  }
  func.func @transform_0(%arg0: i32, %arg1: i32) -> (i32, i32) {
    %c1_i32 = arith.constant 1 : i32
    %0 = arith.muli %arg0, %c1_i32 : i32
    %1 = arith.addi %0, %arg1 : i32
    %c0_i32 = arith.constant 0 : i32
    %2 = arith.minsi %1, %c0_i32 : i32
    %c0_i32_0 = arith.constant 0 : i32
    %c0_i32_1 = arith.constant 0 : i32
    return %2, %c0_i32_0 : i32, i32
  }
  func.func @transform_1(%arg0: i32, %arg1: i32) -> (i32, i32) {
    %c1_i32 = arith.constant 1 : i32
    %0 = arith.muli %arg0, %c1_i32 : i32
    %1 = arith.addi %0, %arg1 : i32
    %c0_i32 = arith.constant 0 : i32
    %2 = arith.minsi %1, %c0_i32 : i32
    %c0_i32_0 = arith.constant 0 : i32
    %c0_i32_1 = arith.constant 0 : i32
    return %2, %c0_i32_0 : i32, i32
  }
  func.func @transform_2(%arg0: i32, %arg1: i32) -> (i32, i32) {
    %c1_i32 = arith.constant 1 : i32
    %0 = arith.muli %arg0, %c1_i32 : i32
    %1 = arith.addi %0, %arg1 : i32
    %c0_i32 = arith.constant 0 : i32
    %2 = arith.minsi %1, %c0_i32 : i32
    %c0_i32_0 = arith.constant 0 : i32
    %c0_i32_1 = arith.constant 0 : i32
    return %2, %c0_i32_0 : i32, i32
  }
  func.func @transform_3(%arg0: i32, %arg1: i32) -> (i32, i32) {
    %c1_i32 = arith.constant 1 : i32
    %0 = arith.muli %arg0, %c1_i32 : i32
    %1 = arith.addi %0, %arg1 : i32
    %c0_i32 = arith.constant 0 : i32
    %2 = arith.minsi %1, %c0_i32 : i32
    %c0_i32_0 = arith.constant 0 : i32
    %c0_i32_1 = arith.constant 0 : i32
    return %2, %c0_i32_0 : i32, i32
  }
  func.func @transform_4(%arg0: i32, %arg1: i32) -> (i32, i32) {
    %c1_i32 = arith.constant 1 : i32
    %0 = arith.muli %arg0, %c1_i32 : i32
    %1 = arith.addi %0, %arg1 : i32
    %c0_i32 = arith.constant 0 : i32
    %2 = arith.minsi %1, %c0_i32 : i32
    %c0_i32_0 = arith.constant 0 : i32
    %c0_i32_1 = arith.constant 0 : i32
    return %2, %c0_i32_0 : i32, i32
  }
  func.func @transform_5(%arg0: i32, %arg1: i32) -> (i32, i32) {
    %c1_i32 = arith.constant 1 : i32
    %0 = arith.muli %arg0, %c1_i32 : i32
    %1 = arith.addi %0, %arg1 : i32
    %c0_i32 = arith.constant 0 : i32
    %2 = arith.minsi %1, %c0_i32 : i32
    %c0_i32_0 = arith.constant 0 : i32
    %c0_i32_1 = arith.constant 0 : i32
    return %2, %c0_i32_0 : i32, i32
  }
  func.func @transform_6(%arg0: i32, %arg1: i32) -> (i32, i32) {
    %c0_i32 = arith.constant 0 : i32
    %c0_i32_0 = arith.constant 0 : i32
    return %arg0, %c0_i32 : i32, i32
  }
}

</mosaic_0001>

<bundles_post_ra>
// kernel: cel_loss.1
= control target key start
LH: loop header
LB: loop body
LE: loop exit
PB: predicated region body
PF: predicated region fallthrough
CT: control target
= control target key end

     0   :  { %11 = vsyncpa [#allocation3], 0  ;;  %s1362_s0 = inlined_call_operand.vmem [shape: f32[32,16], index: 0, kind: input, shape index: {}]   ;;  %s1363_s1 = inlined_call_operand.vmem [shape: f32[32,16], index: 1, kind: input, shape index: {}]   ;;  %s1364_s2 = inlined_call_operand.hbm [shape: f32[32,16], index: 2, kind: input, shape index: {}]   ;;  %s1365_s3 = inlined_call_operand.hbm [shape: f32[32,16], index: 3, kind: input, shape index: {}]   ;;  %s1366_s4 = inlined_call_operand.hbm [shape: f32[32,16], index: 4, kind: input, shape index: {}]   ;;  %s1367_s5 = inlined_call_operand.hbm [shape: f32[32,16], index: 5, kind: input, shape index: {}]   ;;  %s1368_s6 = inlined_call_operand.vmem [shape: f32[8,16], index: 6, kind: output, shape index: {}]  }
   0x1   :  { %12 = vsyncpa [#allocation5], 0 }
   0x2   :  { %13 = vsyncpa [#allocation8], 0  ;;  %s831_s21 = smov [#allocation4]   ;;  %s832_s23 = smov [#allocation2]  }
   0x3   :  { %s71_s22 = sshll.u32 %s831_s21, 4  ;;  %s53_s24 = sshll.u32 %s832_s23, 4  ;;  %s72_s22 = int_to_ptr.vmem [resolvable:$true] %s71_s22  ;;  %s54_s24 = int_to_ptr.vmem [resolvable:$true] %s53_s24 }
   0x4   :  { %s753_s25 = scalar_lea.vmem %s72_s22, 512  ;;  %p758_p1 = scmp.lt.s32.totalorder %s72_s22, %s72_s22 }
   0x5   :  { %p754_p0 = scmp.ne.s32.totalorder %s72_s22, %s753_s25  ;;  %p759_p2 = scmp.lt.s32.totalorder %s753_s25, %s753_s25 }
   0x7   :  { %p760_p3 = por %p759_p2, %p758_p1 }
   0x9   :  { %p761_p4 = pnand %p760_p3, %p754_p0 }
   0xb   :  { %764 = shalt.err (!%p761_p4)
}
   0xc   :  { %s833_s26 = smov 128   ;;  %s834_s27 = smov 8  }
   0xd   :  { %77 = dma.hbm_to_vmem [thread:$0]  %s1365_s3, 512, %s72_s22, [#allocation5], %s833_s26, %s833_s26, %s834_s27  }
   0xe   :  { %s773_s30 = scalar_lea.vmem %s54_s24, 512  ;;  %p778_p6 = scmp.lt.s32.totalorder %s54_s24, %s54_s24 }
   0xf   :  { %p774_p5 = scmp.ne.s32.totalorder %s54_s24, %s773_s30  ;;  %p779_p7 = scmp.lt.s32.totalorder %s773_s30, %s773_s30 }
  0x11   :  { %p780_p8 = por %p779_p7, %p778_p6 }
  0x13   :  { %p781_p9 = pnand %p780_p8, %p774_p5 }
  0x15   :  { %784 = shalt.err (!%p781_p9)
}
  0x16   :  { %59 = dma.hbm_to_vmem [thread:$0]  %s1364_s2, 512, %s54_s24, [#allocation3], %s833_s26, %s833_s26, %s834_s27  }
  0x17   :  { %s835_s9 = smov [#allocation6]   ;;  %s836_s11 = smov [#allocation7]  }
  0x18   :  { %s89_s10 = sshll.u32 %s835_s9, 4  ;;  %s107_s12 = sshll.u32 %s836_s11, 4  ;;  %s90_s10 = int_to_ptr.vmem [resolvable:$true] %s89_s10  ;;  %s108_s12 = int_to_ptr.vmem [resolvable:$true] %s107_s12 }
  0x19   :  { %s793_s3 = scalar_lea.vmem %s90_s10, 512  ;;  %p798_p11 = scmp.lt.s32.totalorder %s90_s10, %s90_s10 }
  0x1a   :  { %p794_p10 = scmp.ne.s32.totalorder %s90_s10, %s793_s3  ;;  %p799_p12 = scmp.lt.s32.totalorder %s793_s3, %s793_s3 }
  0x1c   :  { %p800_p13 = por %p799_p12, %p798_p11 }
  0x1e   :  { %p801_p0 = pnand %p800_p13, %p794_p10 }
  0x20   :  { %804 = shalt.err (!%p801_p0)
}
  0x21   :  { %95 = dma.hbm_to_vmem [thread:$0]  %s1366_s4, 512, %s90_s10, [#allocation5], %s833_s26, %s833_s26, %s834_s27  }
  0x22   :  { %s813_s2 = scalar_lea.vmem %s108_s12, 512  ;;  %p818_p2 = scmp.lt.s32.totalorder %s108_s12, %s108_s12 }
  0x23   :  { %p814_p1 = scmp.ne.s32.totalorder %s108_s12, %s813_s2  ;;  %p819_p3 = scmp.lt.s32.totalorder %s813_s2, %s813_s2 }
  0x25   :  { %p820_p4 = por %p819_p3, %p818_p2 }
  0x27   :  { %p821_p5 = pnand %p820_p4, %p814_p1 }
  0x29   :  { %824 = shalt.err (!%p821_p5)
}
  0x2a   :  { %113 = dma.hbm_to_vmem [thread:$0]  %s1367_s5, 512, %s108_s12, [#allocation8], %s833_s26, %s833_s26, %s834_s27  }
  0x2b   :  { %825 = dma.done.wait [#allocation3], 512  }
  0x2c   :  { %826 = vsyncadd [#allocation3], 4294966784 }
  0x2d   :  { %827 = dma.done.wait [#allocation5], 1024  }
  0x2e   :  { %828 = vsyncadd [#allocation5], 4294966272 }
  0x2f   :  { %829 = dma.done.wait [#allocation8], 512  }
  0x30   :  { %830 = vsyncadd [#allocation8], 4294966784  ;;  %vm186_vm0 = vcmask 130048   ;;  %v837_v0 = vmov 0.0   ;;  %v904_v1 = vld [vmem:[%s1363_s1] sm:$0xff]  ;;  %v909_v2 = vld [vmem:[%s1363_s1 + $0x8] sm:$0xff] }
  0x31   :  { %187 = vst.msk [vmem:[%s1368_s6] sm:$0xff] %vm186_vm0, %v837_v0  ;;  %v914_v3 = vld [vmem:[%s1363_s1 + $0x10] sm:$0xff]  ;;  %v919_v4 = vld [vmem:[%s1363_s1 + $0x18] sm:$0xff]  ;;  %v196_v5 = vand.u32 2147483647, %v904_v1  ;;  %v925_v13 = vld [vmem:[#allocation2] sm:$0xff] }
  0x32   :  { %v197_v6 = vand.u32 2147483647, %v909_v2  ;;  %v198_v7 = vand.u32 2147483647, %v914_v3  ;;  %v199_v8 = vand.u32 2147483647, %v919_v4 }
  0x33   :  { %v200_v9 = vsub.f32 0.0, %v196_v5  ;;  %v927_v14 = vld [vmem:[#allocation2 + $0x8] sm:$0xff]  ;;  %v929_v15 = vld [vmem:[#allocation2 + $0x10] sm:$0xff]  ;;  %v931_v18 = vld [vmem:[#allocation2 + $0x18] sm:$0xff]  ;;  %v282_v21 = vand.u32 2147483647, %v925_v13 }
  0x34   :  { %v201_v10 = vsub.f32 0.0, %v197_v6  ;;  %v202_v11 = vsub.f32 0.0, %v198_v7  ;;  %v203_v12 = vsub.f32 0.0, %v199_v8  ;;  %v283_v22 = vand.u32 2147483647, %v927_v14  ;;  %v940_v28 = vld [vmem:[%s1362_s0] sm:$0xff] }
  0x35   :  { %v204_v16 = vmul.f32 1.442695, %v200_v9  ;;  %v284_v23 = vand.u32 2147483647, %v929_v15  ;;  %v285_v24 = vand.u32 2147483647, %v931_v18  ;;  %v252_v43 = vmul.f32 %v904_v1, %v940_v28 }
  0x36   :  { %v206_v17 = vmul.f32 1.442695, %v201_v10  ;;  %v208_v19 = vmul.f32 1.442695, %v202_v11  ;;  %v210_v20 = vmul.f32 1.442695, %v203_v12  ;;  %v338_v0 = vmul.f32 %v925_v13, %v940_v28 }
  0x37   :  { %665 = vpow2.f32 %v204_v16  ;;  %v286_v25 = vsub.f32 0.0, %v282_v21  ;;  %v287_v26 = vsub.f32 0.0, %v283_v22  ;;  %v288_v27 = vsub.f32 0.0, %v284_v23  ;;  %v942_v30 = vld [vmem:[#allocation4] sm:$0xff]  ;;  %v944_v31 = vld [vmem:[#allocation4 + $0x8] sm:$0xff]  ;;  %v946_v36 = vld [vmem:[#allocation4 + $0x10] sm:$0xff] }
  0x38   :  { %667 = vpow2.f32 %v206_v17  ;;  %v289_v29 = vsub.f32 0.0, %v285_v24  ;;  %v948_v37 = vld [vmem:[#allocation4 + $0x18] sm:$0xff]  ;;  %v953_v38 = vld [vmem:[%s1362_s0 + $0x8] sm:$0xff]  ;;  %v367_v39 = vand.u32 2147483647, %v942_v30  ;;  %v960_v41 = vld [vmem:[%s1362_s0 + $0x10] sm:$0xff] }
  0x39   :  { %669 = vpow2.f32 %v208_v19  ;;  %v290_v32 = vmul.f32 1.442695, %v286_v25  ;;  %v292_v33 = vmul.f32 1.442695, %v287_v26  ;;  %v294_v34 = vmul.f32 1.442695, %v288_v27 }
  0x3a   :  { %671 = vpow2.f32 %v210_v20  ;;  %v296_v35 = vmul.f32 1.442695, %v289_v29  ;;  %v368_v40 = vand.u32 2147483647, %v944_v31  ;;  %v248_v42 = vmax.f32 %v904_v1, 0.0  ;;  %v968_v44 = vld [vmem:[%s1362_s0 + $0x18] sm:$0xff] }
  0x3b   :  { %673 = vpow2.f32 %v290_v32  ;;  %v369_v45 = vand.u32 2147483647, %v946_v36  ;;  %v370_v46 = vand.u32 2147483647, %v948_v37  ;;  %v371_v47 = vsub.f32 0.0, %v367_v39 }
  0x3c   :  { %675 = vpow2.f32 %v292_v33  ;;  %v253_v48 = vmul.f32 %v909_v2, %v953_v38  ;;  %v372_v49 = vsub.f32 0.0, %v368_v40  ;;  %v249_v50 = vmax.f32 %v909_v2, 0.0 }
  0x3d   :  { %677 = vpow2.f32 %v294_v34  ;;  %v250_v51 = vmax.f32 %v914_v3, 0.0  ;;  %v373_v52 = vsub.f32 0.0, %v369_v45  ;;  %v375_v53 = vmul.f32 1.442695, %v371_v47 }
  0x3e   :  { %679 = vpow2.f32 %v296_v35  ;;  %v251_v54 = vmax.f32 %v919_v4, 0.0  ;;  %v254_v55 = vmul.f32 %v914_v3, %v960_v41  ;;  %v255_v56 = vmul.f32 %v919_v4, %v968_v44 }
  0x3f   :  { %v377_v57 = vmul.f32 1.442695, %v372_v49  ;;  %v981_v58 = vsub.f32 %v248_v42, %v252_v43  ;;  %v374_v59 = vsub.f32 0.0, %v370_v46  ;;  %681 = vpow2.f32 %v375_v53 }
  0x40   :  { %v379_v60 = vmul.f32 1.442695, %v373_v52  ;;  %v334_v62 = vmax.f32 %v925_v13, 0.0  ;;  %v335_v63 = vmax.f32 %v927_v14, 0.0  ;;  %v336_v3 = vmax.f32 %v929_v15, 0.0 }
  0x41   :  { %683 = vpow2.f32 %v377_v57  ;;  %v339_v4 = vmul.f32 %v927_v14, %v953_v38  ;;  %v340_v5 = vmul.f32 %v929_v15, %v960_v41  ;;  %v337_v8 = vmax.f32 %v931_v18, 0.0 }
  0x42   :  { %v341_v9 = vmul.f32 %v931_v18, %v968_v44  ;;  %685 = vpow2.f32 %v379_v60  ;;  %v1006_v12 = vsub.f32 %v249_v50, %v253_v48  ;;  %v381_v13 = vmul.f32 1.442695, %v374_v59 }
  0x43   :  { %v1008_v14 = vsub.f32 %v250_v51, %v254_v55  ;;  %v1010_v15 = vsub.f32 %v251_v54, %v255_v56  ;;  %v1012_v16 = vsub.f32 %v334_v62, %v338_v0  ;;  %v1015_v18 = vsub.f32 %v335_v63, %v339_v4 }
  0x44   :  { %v983_v61 = vpop.eup %665  ;;  %v1017_v19 = vsub.f32 %v336_v3, %v340_v5  ;;  %v1022_v22 = vsub.f32 %v337_v8, %v341_v9  ;;  %v419_v23 = vmax.f32 %v942_v30, 0.0  ;;  %v420_v24 = vmax.f32 %v944_v31, 0.0 }
  0x45   :  { %v989_v1 = vpop.eup %667  ;;  %v212_v2 = vadd.f32 1.0, %v983_v61  ;;  %v215_v21 = vmul.f32 -0.5, %v983_v61  ;;  %v421_v29 = vmax.f32 %v946_v36, 0.0  ;;  %v422_v33 = vmax.f32 %v948_v37, 0.0 }
  0x46   :  { %v997_v6 = vpop.eup %669  ;;  %v221_v7 = vadd.f32 1.0, %v989_v1  ;;  %v224_v26 = vmul.f32 -0.5, %v989_v1  ;;  %v423_v34 = vmul.f32 %v942_v30, %v940_v28  ;;  %v424_v35 = vmul.f32 %v944_v31, %v953_v38 }
  0x47   :  { %v1003_v10 = vpop.eup %671  ;;  %687 = vlog2.f32 %v212_v2  ;;  %v230_v11 = vadd.f32 1.0, %v997_v6  ;;  %v218_v40 = vand.u32 2147483647, %v983_v61  ;;  %v1044_v43 = vmul.f32 %v946_v36, %v960_v41 }
  0x48   :  { %689 = vlog2.f32 %v221_v7  ;;  %v239_v17 = vadd.f32 1.0, %v1003_v10  ;;  %v1019_v20 = vpop.eup %673  ;;  %v216_v45 = vadd.f32 1.0, %v215_v21  ;;  %v227_v46 = vand.u32 2147483647, %v989_v1 }
  0x49   :  { %691 = vlog2.f32 %v230_v11  ;;  %v1026_v25 = vpop.eup %675  ;;  %v298_v27 = vadd.f32 1.0, %v1019_v20  ;;  %v233_v47 = vmul.f32 -0.5, %v997_v6  ;;  %v225_v48 = vadd.f32 1.0, %v224_v26 }
  0x4a   :  { %693 = vpow2.f32 %v381_v13  ;;  %v1031_v32 = vpop.eup %677  ;;  %v307_v42 = vadd.f32 1.0, %v1026_v25  ;;  %v236_v31 = vand.u32 2147483647, %v997_v6  ;;  %v1052_v49 = vmul.f32 %v948_v37, %v968_v44 }
  0x4b   :  { %695 = vlog2.f32 %v239_v17  ;;  %v1038_v39 = vpop.eup %679  ;;  %v316_v30 = vadd.f32 1.0, %v1031_v32  ;;  %v242_v51 = vmul.f32 -0.5, %v1003_v10  ;;  %v301_v52 = vmul.f32 -0.5, %v1019_v20 }
  0x4c   :  { %697 = vlog2.f32 %v298_v27  ;;  %v1054_v50 = vpop.eup %681  ;;  %v325_v53 = vadd.f32 1.0, %v1038_v39  ;;  %vm1061_vm1 = vcmp.lt.f32.partialorder %v218_v40, 0.0004427343  ;;  %v310_v56 = vmul.f32 -0.5, %v1026_v25 }
  0x4d   :  { %699 = vlog2.f32 %v307_v42  ;;  %v1066_v57 = vsub.f32 %v419_v23, %v423_v34  ;;  %v1068_v59 = vsub.f32 %v420_v24, %v424_v35  ;;  %v217_v60 = vmul.f32 %v983_v61, %v216_v45 }
  0x4e   :  { %701 = vlog2.f32 %v316_v30  ;;  %v1059_v54 = vpop.eup %683  ;;  %vm1071_vm2 = vcmp.lt.f32.partialorder %v227_v46, 0.0004427343  ;;  %v234_v63 = vadd.f32 1.0, %v233_v47  ;;  %v383_v0 = vadd.f32 1.0, %v1054_v50 }
  0x4f   :  { %v1076_v2 = vpop.eup %685  ;;  %v226_v3 = vmul.f32 %v989_v1, %v225_v48  ;;  %vm1079_vm3 = vcmp.lt.f32.partialorder %v236_v31, 0.0004427343  ;;  %v245_v5 = vand.u32 2147483647, %v1003_v10  ;;  %703 = vlog2.f32 %v325_v53 }
  0x50   :  { %v243_v61 = vadd.f32 1.0, %v242_v51  ;;  %v302_v8 = vadd.f32 1.0, %v301_v52  ;;  %v304_v9 = vand.u32 2147483647, %v1019_v20  ;;  %v392_v11 = vadd.f32 1.0, %v1059_v54 }
  0x51   :  { %v311_v17 = vadd.f32 1.0, %v310_v56  ;;  %v313_v21 = vand.u32 2147483647, %v1026_v25  ;;  %v319_v1 = vmul.f32 -0.5, %v1031_v32  ;;  %705 = vlog2.f32 %v383_v0 }
  0x52   :  { %v235_v27 = vmul.f32 %v997_v6, %v234_v63  ;;  %707 = vlog2.f32 %v392_v11  ;;  %vm1089_vm4 = vcmp.lt.f32.partialorder %v245_v5, 0.0004427343  ;;  %v322_v35 = vand.u32 2147483647, %v1031_v32  ;;  %v1167_v5 = vld [vmem:[#allocation6 + $0x18] sm:$0xff] }
  0x53   :  { %v328_v40 = vmul.f32 -0.5, %v1038_v39  ;;  %v401_v42 = vadd.f32 1.0, %v1076_v2  ;;  %v244_v46 = vmul.f32 %v1003_v10, %v243_v61  ;;  %v303_v47 = vmul.f32 %v1019_v20, %v302_v8 }
  0x54   :  { %v688_v7 = vpop.eup %687  ;;  %vm1100_vm5 = vcmp.lt.f32.partialorder %v304_v9, 0.0004427343  ;;  %v386_v6 = vmul.f32 -0.5, %v1054_v50  ;;  %v312_v51 = vmul.f32 %v1026_v25, %v311_v17  ;;  %vm1106_vm6 = vcmp.lt.f32.partialorder %v313_v21, 0.0004427343 }
  0x55   :  { %v690_v13 = vpop.eup %689  ;;  %v214_v24 = vmul.f32 0.6931472, %v688_v7  ;;  %v320_v53 = vadd.f32 1.0, %v319_v1  ;;  %v331_v63 = vand.u32 2147483647, %v1038_v39  ;;  %709 = vlog2.f32 %v401_v42 }
  0x56   :  { %v692_v23 = vpop.eup %691  ;;  %v223_v26 = vmul.f32 0.6931472, %v690_v13  ;;  %vm1115_vm7 = vcmp.lt.f32.partialorder %v322_v35, 0.0004427343  ;;  %v329_v25 = vadd.f32 1.0, %v328_v40  ;;  %v387_v9 = vadd.f32 1.0, %v386_v6 }
  0x57   :  { %v1096_v45 = vpop.eup %693  ;;  %v232_v31 = vmul.f32 0.6931472, %v692_v23  ;;  %v220_v10 = vsel %vm1061_vm1, %v217_v60, %v214_v24  ;;  %v389_v55 = vand.u32 2147483647, %v1054_v50  ;;  %v395_v60 = vmul.f32 -0.5, %v1059_v54 }
  0x58   :  { %v696_v48 = vpop.eup %695  ;;  %v229_v20 = vsel %vm1071_vm2, %v226_v3, %v223_v26  ;;  %v410_v7 = vadd.f32 1.0, %v1096_v45  ;;  %v260_v11 = vadd.f32 %v981_v58, %v220_v10  ;;  %v321_v1 = vmul.f32 %v1031_v32, %v320_v53 }
  0x59   :  { %v698_v56 = vpop.eup %697  ;;  %v241_v8 = vmul.f32 0.6931472, %v696_v48  ;;  %v238_v3 = vsel %vm1079_vm3, %v235_v27, %v232_v31  ;;  %v261_v13 = vadd.f32 %v1006_v12, %v229_v20  ;;  %v398_v23 = vand.u32 2147483647, %v1059_v54  ;;  %v1156_v31 = vld [vmem:[#allocation6] sm:$0xff]  ;;  %v1162_v20 = vld [vmem:[#allocation6 + $0x10] sm:$0xff] }
  0x5a   :  { %v300_v0 = vmul.f32 0.6931472, %v698_v56  ;;  %v700_v61 = vpop.eup %699  ;;  %711 = vlog2.f32 %v410_v7  ;;  %vm1132_vm8 = vcmp.lt.f32.partialorder %v331_v63, 0.0004427343  ;;  %v404_v58 = vmul.f32 -0.5, %v1076_v2 }
  0x5b   :  { %v702_v62 = vpop.eup %701  ;;  %v309_v17 = vmul.f32 0.6931472, %v700_v61  ;;  %v247_v27 = vsel %vm1089_vm4, %v244_v46, %v241_v8  ;;  %v262_v32 = vadd.f32 %v1008_v14, %v238_v3  ;;  %v330_v35 = vmul.f32 %v1038_v39, %v329_v25 }
  0x5c   :  { %v318_v21 = vmul.f32 0.6931472, %v702_v62  ;;  %v306_v24 = vsel %vm1100_vm5, %v303_v47, %v300_v0  ;;  %v704_v12 = vpop.eup %703  ;;  %v396_v40 = vadd.f32 1.0, %v395_v60  ;;  %v265_v42 = vsel %vm186_vm0, %v260_v11, 0.0 }
  0x5d   :  { %v315_v26 = vsel %vm1106_vm6, %v312_v51, %v309_v17  ;;  %v266_v47 = vsel %vm186_vm0, %v261_v13, 0.0  ;;  %v388_v30 = vmul.f32 %v1054_v50, %v387_v9  ;;  %vm1144_vm9 = vcmp.lt.f32.partialorder %v389_v55, 0.0004427343  ;;  %v1158_v51 = vld [vmem:[#allocation6 + $0x8] sm:$0xff] }
  0x5e   :  { %v706_v48 = vpop.eup %705  ;;  %v324_v34 = vsel %vm1115_vm7, %v321_v1, %v318_v21  ;;  %v346_v46 = vadd.f32 %v1012_v16, %v306_v24  ;;  %v347_v14 = vadd.f32 %v1015_v18, %v315_v26  ;;  %vm1152_vm10 = vcmp.lt.f32.partialorder %v398_v23, 0.0004427343 }
  0x5f   :  { %v708_v50 = vpop.eup %707  ;;  %v263_v52 = vadd.f32 %v1010_v15, %v247_v27  ;;  %v327_v53 = vmul.f32 0.6931472, %v704_v12  ;;  %v405_v56 = vadd.f32 1.0, %v404_v58  ;;  %v407_v10 = vand.u32 2147483647, %v1076_v2 }
  0x60   :  { %v267_v16 = vadd.f32 %v266_v47, %v265_v42  ;;  %v268_v18 = vsel %vm186_vm0, %v262_v32, 0.0  ;;  %v397_v63 = vmul.f32 %v1059_v54, %v396_v40  ;;  %v413_v0 = vmul.f32 -0.5, %v1096_v45 }
  0x61   :  { %v348_v25 = vadd.f32 %v1017_v19, %v324_v34  ;;  %v385_v7 = vmul.f32 0.6931472, %v706_v48  ;;  %v394_v61 = vmul.f32 0.6931472, %v708_v50  ;;  %v452_v15 = vand.u32 2147483647, %v1156_v31 }
  0x62   :  { %v350_v8 = vsel %vm186_vm0, %v346_v46, 0.0  ;;  %v351_v9 = vsel %vm186_vm0, %v347_v14, 0.0  ;;  %v453_v55 = vand.u32 2147483647, %v1158_v51  ;;  %v454_v60 = vand.u32 2147483647, %v1162_v20  ;;  %v710_v62 = vpop.eup %709 }
  0x63   :  { %v270_v54 = vsel %vm186_vm0, %v263_v52, 0.0  ;;  %v333_v3 = vsel %vm1132_vm8, %v330_v35, %v327_v53  ;;  %v406_v19 = vmul.f32 %v1076_v2, %v405_v56  ;;  %vm1179_vm11 = vcmp.lt.f32.partialorder %v407_v10, 0.0004427343 }
  0x64   :  { %v414_v13 = vadd.f32 1.0, %v413_v0  ;;  %v455_v17 = vand.u32 2147483647, %v1167_v5  ;;  %v456_v21 = vsub.f32 0.0, %v452_v15  ;;  %v457_v1 = vsub.f32 0.0, %v453_v55 }
  0x65   :  { %v352_v23 = vadd.f32 %v351_v9, %v350_v8  ;;  %v391_v24 = vsel %vm1144_vm9, %v388_v30, %v385_v7  ;;  %v400_v26 = vsel %vm1152_vm10, %v397_v63, %v394_v61  ;;  %v458_v4 = vsub.f32 0.0, %v454_v60 }
  0x66   :  { %v349_v58 = vadd.f32 %v1022_v22, %v333_v3  ;;  %v353_v2 = vsel %vm186_vm0, %v348_v25, 0.0  ;;  %v403_v12 = vmul.f32 0.6931472, %v710_v62  ;;  %v459_v27 = vsub.f32 0.0, %v455_v17 }
  0x67   :  { %v712_v32 = vpop.eup %711  ;;  %v269_v35 = vadd.f32 %v268_v18, %v267_v16  ;;  %v416_v40 = vand.u32 2147483647, %v1096_v45  ;;  %v460_v42 = vmul.f32 1.442695, %v456_v21  ;;  %v462_v47 = vmul.f32 1.442695, %v457_v1 }
  0x68   :  { %v431_v48 = vadd.f32 %v1066_v57, %v391_v24  ;;  %v432_v30 = vadd.f32 %v1068_v59, %v400_v26  ;;  %v464_v6 = vmul.f32 1.442695, %v458_v4  ;;  %v466_v34 = vmul.f32 1.442695, %v459_v27  ;;  %v1204_v59 = vld [vmem:[#allocation7] sm:$0xff]  ;;  %v1213_v16 = vld [vmem:[#allocation7 + $0x10] sm:$0xff] }
  0x69   :  { %v354_v46 = vadd.f32 %v353_v2, %v352_v23  ;;  %v415_v14 = vmul.f32 %v1096_v45, %v414_v13  ;;  %v429_v22 = vsub.f32 %v421_v29, %v1044_v43  ;;  %713 = vpow2.f32 %v460_v42  ;;  %v1206_v45 = vld [vmem:[#allocation7 + $0x8] sm:$0xff]  ;;  %v1215_v18 = vld [vmem:[#allocation7 + $0x18] sm:$0xff] }
  0x6a   :  { %v355_v39 = vsel %vm186_vm0, %v349_v58, 0.0  ;;  %v409_v50 = vsel %vm1179_vm11, %v406_v19, %v403_v12  ;;  %v412_v52 = vmul.f32 0.6931472, %v712_v32  ;;  %715 = vpow2.f32 %v462_v47 }
  0x6b   :  { %vm1200_vm12 = vcmp.lt.f32.partialorder %v416_v40, 0.0004427343  ;;  %717 = vpow2.f32 %v464_v6  ;;  %v435_v36 = vsel %vm186_vm0, %v431_v48, 0.0  ;;  %v436_v29 = vsel %vm186_vm0, %v432_v30, 0.0 }
  0x6c   :  { %719 = vpow2.f32 %v466_v34  ;;  %v271_v43 = vadd.f32 %v270_v54, %v269_v35  ;;  %v356_v53 = vadd.f32 %v355_v39, %v354_v46  ;;  %v430_v56 = vsub.f32 %v422_v33, %v1052_v49 }
  0x6d   :  { %v433_v10 = vadd.f32 %v429_v22, %v409_v50  ;;  %v418_v63 = vsel %vm1200_vm12, %v415_v14, %v412_v52  ;;  %v537_v0 = vand.u32 2147483647, %v1204_v59  ;;  %v538_v25 = vand.u32 2147483647, %v1206_v45 }
  0x6e   :  { %v437_v7 = vadd.f32 %v436_v29, %v435_v36  ;;  %v539_v61 = vand.u32 2147483647, %v1213_v16  ;;  %v540_v15 = vand.u32 2147483647, %v1215_v18  ;;  %v272_v33 = vrot.slane %v271_v43, 4 }
  0x6f   :  { %v541_v8 = vsub.f32 0.0, %v537_v0  ;;  %v542_v37 = vsub.f32 0.0, %v538_v25  ;;  %v357_v49 = vrot.slane %v356_v53, 4  ;;  %v434_v9 = vadd.f32 %v430_v56, %v418_v63 }
  0x70   :  { %v438_v55 = vsel %vm186_vm0, %v433_v10, 0.0  ;;  %v543_v60 = vsub.f32 0.0, %v539_v61  ;;  %v544_v62 = vsub.f32 0.0, %v540_v15  ;;  %v273_v17 = vadd.f32 %v272_v33, %v271_v43 }
  0x71   :  { %v545_v54 = vmul.f32 1.442695, %v541_v8  ;;  %v547_v3 = vmul.f32 1.442695, %v542_v37  ;;  %v439_v19 = vadd.f32 %v438_v55, %v437_v7  ;;  %v358_v21 = vadd.f32 %v357_v49, %v356_v53 }
  0x72   :  { %v549_v11 = vmul.f32 1.442695, %v543_v60  ;;  %v551_v13 = vmul.f32 1.442695, %v544_v62  ;;  %v440_v1 = vsel %vm186_vm0, %v434_v9, 0.0  ;;  %v274_v27 = vrot.slane %v273_v17, 2 }
  0x73   :  { %721 = vpow2.f32 %v545_v54  ;;  %v441_v58 = vadd.f32 %v440_v1, %v439_v19  ;;  %v359_v32 = vrot.slane %v358_v21, 2  ;;  %v504_v35 = vmax.f32 %v1156_v31, 0.0 }
  0x74   :  { %723 = vpow2.f32 %v547_v3  ;;  %v505_v42 = vmax.f32 %v1158_v51, 0.0  ;;  %v506_v47 = vmax.f32 %v1162_v20, 0.0  ;;  %v507_v30 = vmax.f32 %v1167_v5, 0.0 }
  0x75   :  { %725 = vpow2.f32 %v549_v11  ;;  %v508_v6 = vmul.f32 %v1156_v31, %v940_v28  ;;  %v509_v34 = vmul.f32 %v1158_v51, %v953_v38  ;;  %v442_v46 = vrot.slane %v441_v58, 4 }
  0x76   :  { %v714_v23 = vpop.eup %713  ;;  %727 = vpow2.f32 %v551_v13  ;;  %v510_v14 = vmul.f32 %v1162_v20, %v960_v41  ;;  %v511_v22 = vmul.f32 %v1167_v5, %v968_v44  ;;  %v1247_v52 = vadd.f32 %v274_v27, %v273_v17 }
  0x77   :  { %v1225_v24 = vpop.eup %715  ;;  %v468_v26 = vadd.f32 1.0, %v714_v23  ;;  %v471_v39 = vmul.f32 -0.5, %v714_v23  ;;  %v1249_v57 = vadd.f32 %v359_v32, %v358_v21  ;;  %v512_v31 = vsub.f32 %v504_v35, %v508_v6 }
  0x78   :  { %v1227_v4 = vpop.eup %717  ;;  %v477_v2 = vadd.f32 1.0, %v1225_v24  ;;  %v480_v50 = vmul.f32 -0.5, %v1225_v24  ;;  %v513_v36 = vsub.f32 %v505_v42, %v509_v34  ;;  %v1251_v29 = vadd.f32 %v442_v46, %v441_v58 }
  0x79   :  { %v1230_v12 = vpop.eup %719  ;;  %729 = vlog2.f32 %v468_v26  ;;  %v486_v40 = vadd.f32 1.0, %v1227_v4  ;;  %v489_v51 = vmul.f32 -0.5, %v1227_v4  ;;  %v514_v43 = vsub.f32 %v506_v47, %v510_v14 }
  0x7a   :  { %731 = vlog2.f32 %v477_v2  ;;  %v495_v48 = vadd.f32 1.0, %v1230_v12  ;;  %v515_v53 = vsub.f32 %v507_v30, %v511_v22  ;;  %v472_v56 = vadd.f32 1.0, %v471_v39 }
  0x7b   :  { %733 = vlog2.f32 %v486_v40  ;;  %v498_v5 = vmul.f32 -0.5, %v1230_v12  ;;  %v589_v10 = vmax.f32 %v1204_v59, 0.0  ;;  %v590_v63 = vmax.f32 %v1206_v45, 0.0 }
  0x7c   :  { %735 = vlog2.f32 %v495_v48  ;;  %v474_v25 = vand.u32 2147483647, %v714_v23  ;;  %v481_v7 = vadd.f32 1.0, %v480_v50  ;;  %v591_v15 = vmax.f32 %v1213_v16, 0.0 }
  0x7d   :  { %v483_v37 = vand.u32 2147483647, %v1225_v24  ;;  %v492_v33 = vand.u32 2147483647, %v1227_v4  ;;  %v592_v9 = vmax.f32 %v1215_v18, 0.0  ;;  %v490_v55 = vadd.f32 1.0, %v489_v51 }
  0x7e   :  { %v593_v62 = vmul.f32 %v1204_v59, %v940_v28  ;;  %v473_v3 = vmul.f32 %v714_v23, %v472_v56  ;;  %v499_v19 = vadd.f32 1.0, %v498_v5  ;;  %v501_v11 = vand.u32 2147483647, %v1230_v12 }
  0x7f   :  { %vm1275_vm13 = vcmp.lt.f32.partialorder %v474_v25, 0.0004427343  ;;  %v482_v21 = vmul.f32 %v1225_v24, %v481_v7  ;;  %vm1281_vm14 = vcmp.lt.f32.partialorder %v483_v37, 0.0004427343  ;;  %vm1285_vm15 = vcmp.lt.f32.partialorder %v492_v33, 0.0004427343 }
  0x80   :  { %v1254_v20 = vpop.eup %721  ;;  %v594_v2 = vmul.f32 %v1206_v45, %v953_v38  ;;  %v491_v32 = vmul.f32 %v1227_v4, %v490_v55  ;;  %v500_v42 = vmul.f32 %v1230_v12, %v499_v19  ;;  %vm1296_vm1 = vcmp.lt.f32.partialorder %v501_v11, 0.0004427343 }
  0x81   :  { %v1259_v0 = vpop.eup %723  ;;  %v553_v61 = vadd.f32 1.0, %v1254_v20  ;;  %v556_v24 = vmul.f32 -0.5, %v1254_v20  ;;  %v559_v22 = vand.u32 2147483647, %v1254_v20  ;;  %v595_v12 = vmul.f32 %v1213_v16, %v960_v41 }
  0x82   :  { %v1263_v8 = vpop.eup %725  ;;  %v562_v49 = vadd.f32 1.0, %v1259_v0  ;;  %v565_v48 = vmul.f32 -0.5, %v1259_v0  ;;  %v568_v37 = vand.u32 2147483647, %v1259_v0  ;;  %v596_v55 = vmul.f32 %v1215_v18, %v968_v44 }
  0x83   :  { %737 = vlog2.f32 %v553_v61  ;;  %v571_v60 = vadd.f32 1.0, %v1263_v8  ;;  %v1272_v54 = vpop.eup %727  ;;  %v574_v34 = vmul.f32 -0.5, %v1263_v8  ;;  %v557_v51 = vadd.f32 1.0, %v556_v24 }
  0x84   :  { %739 = vlog2.f32 %v562_v49  ;;  %v580_v1 = vadd.f32 1.0, %v1272_v54  ;;  %v583_v56 = vmul.f32 -0.5, %v1272_v54  ;;  %v577_v49 = vand.u32 2147483647, %v1263_v8 }
  0x85   :  { %741 = vlog2.f32 %v571_v60  ;;  %v575_v41 = vadd.f32 1.0, %v574_v34  ;;  %v597_v60 = vsub.f32 %v589_v10, %v593_v62  ;;  %v558_v19 = vmul.f32 %v1254_v20, %v557_v51 }
  0x86   :  { %v730_v13 = vpop.eup %729  ;;  %743 = vlog2.f32 %v580_v1  ;;  %vm1323_vm2 = vcmp.lt.f32.partialorder %v559_v22, 0.0004427343  ;;  %v598_v44 = vsub.f32 %v590_v63, %v594_v2  ;;  %vm1331_vm3 = vcmp.lt.f32.partialorder %v568_v37, 0.0004427343 }
  0x87   :  { %v732_v26 = vpop.eup %731  ;;  %v470_v58 = vmul.f32 0.6931472, %v730_v13  ;;  %v576_v20 = vmul.f32 %v1263_v8, %v575_v41  ;;  %vm578_vm4 = vcmp.lt.f32.partialorder %v577_v49, 0.0004427343  ;;  %v600_v8 = vsub.f32 %v592_v9, %v596_v55 }
  0x88   :  { %v479_v27 = vmul.f32 0.6931472, %v732_v26  ;;  %v734_v35 = vpop.eup %733  ;;  %v276_v18 = vrot.slane %v1247_v52, 1  ;;  %v361_v9 = vrot.slane %v1249_v57, 1  ;;  %vm618_vm6 = vcmask 1040384  }
  0x89   :  { %v476_v40 = vsel %vm1275_vm13, %v473_v3, %v470_v58  ;;  %v736_v30 = vpop.eup %735  ;;  %v488_v4 = vmul.f32 0.6931472, %v734_v35  ;;  %v444_v58 = vrot.slane %v1251_v29, 2  ;;  %vm620_vm7 = vcmask 1041408  }
  0x8a   :  { %v485_v38 = vsel %vm1281_vm14, %v482_v21, %v479_v27  ;;  %v516_v6 = vadd.f32 %v512_v31, %v476_v40  ;;  %v497_v46 = vmul.f32 0.6931472, %v736_v30  ;;  %v586_v21 = vand.u32 2147483647, %v1272_v54 }
  0x8b   :  { %v517_v14 = vadd.f32 %v513_v36, %v485_v38  ;;  %v494_v39 = vsel %vm1285_vm15, %v491_v32, %v488_v4  ;;  %v566_v36 = vadd.f32 1.0, %v565_v48  ;;  %v445_v38 = vadd.f32 %v444_v58, %v1251_v29 }
  0x8c   :  { %v520_v50 = vsel %vm186_vm0, %v516_v6, 0.0  ;;  %v503_v31 = vsel %vm1296_vm1, %v500_v42, %v497_v46  ;;  %v518_v5 = vadd.f32 %v514_v43, %v494_v39  ;;  %vm587_vm5 = vcmp.lt.f32.partialorder %v586_v21, 0.0004427343 }
  0x8d   :  { %v521_v25 = vsel %vm186_vm0, %v517_v14, 0.0  ;;  %v519_v7 = vadd.f32 %v515_v53, %v503_v31  ;;  %v584_v53 = vadd.f32 1.0, %v583_v56  ;;  %v567_v17 = vmul.f32 %v1259_v0, %v566_v36 }
  0x8e   :  { %v522_v61 = vadd.f32 %v521_v25, %v520_v50  ;;  %v523_v33 = vsel %vm186_vm0, %v518_v5, 0.0  ;;  %v599_v0 = vsub.f32 %v591_v15, %v595_v12  ;;  %v446_v12 = vrot.slane %v445_v38, 1 }
  0x8f   :  { %v525_v43 = vsel %vm186_vm0, %v519_v7, 0.0  ;;  %v585_v2 = vmul.f32 %v1272_v54, %v584_v53  ;;  %v277_v50 = vadd.f32 %v276_v18, %v1247_v52  ;;  %v362_v51 = vadd.f32 %v361_v9, %v1249_v57  ;;  %v628_v52 = vld [vmem:[%s1368_s6] sm:$0xff] }
  0x90   :  { %v524_v3 = vadd.f32 %v523_v33, %v522_v61  ;;  %v738_v11 = vpop.eup %737  ;;  %v447_v31 = vadd.f32 %v446_v12, %v445_v38  ;;  %vm622_vm8 = vcmask 1042432   ;;  %vm624_vm9 = vcmask 1043456  }
  0x91   :  { %v740_v59 = vpop.eup %739  ;;  %v555_v62 = vmul.f32 0.6931472, %v738_v11  ;;  %v619_v25 = vsel %vm618_vm6, %v277_v50, %v362_v51  ;;  %vm626_vm10 = vcmask 1044480  }
  0x92   :  { %v526_v10 = vadd.f32 %v525_v43, %v524_v3  ;;  %v742_v26 = vpop.eup %741  ;;  %v564_v28 = vmul.f32 0.6931472, %v740_v59  ;;  %v621_v37 = vsel %vm620_vm7, %v619_v25, %v447_v31 }
  0x93   :  { %v561_v45 = vsel %vm1323_vm2, %v558_v19, %v555_v62  ;;  %v573_v63 = vmul.f32 0.6931472, %v742_v26  ;;  %v744_v27 = vpop.eup %743 }
  0x94   :  { %v527_v23 = vrot.slane %v526_v10, 4  ;;  %v570_v32 = vsel %vm1331_vm3, %v567_v17, %v564_v28  ;;  %v601_v24 = vadd.f32 %v597_v60, %v561_v45  ;;  %v582_v16 = vmul.f32 0.6931472, %v744_v27 }
  0x95   :  { %v579_v40 = vsel %vm578_vm4, %v576_v20, %v573_v63  ;;  %v602_v15 = vadd.f32 %v598_v44, %v570_v32 }
  0x96   :  { %v528_v35 = vadd.f32 %v527_v23, %v526_v10  ;;  %v603_v42 = vadd.f32 %v599_v0, %v579_v40  ;;  %v605_v47 = vsel %vm186_vm0, %v601_v24, 0.0  ;;  %v588_v30 = vsel %vm587_vm5, %v585_v2, %v582_v16 }
  0x97   :  { %v606_v54 = vsel %vm186_vm0, %v602_v15, 0.0  ;;  %v604_v4 = vadd.f32 %v600_v8, %v588_v30 }
  0x98   :  { %v529_v48 = vrot.slane %v528_v35, 2  ;;  %v607_v6 = vadd.f32 %v606_v54, %v605_v47  ;;  %v608_v34 = vsel %vm186_vm0, %v603_v42, 0.0 }
  0x99   :  { %v610_v14 = vsel %vm186_vm0, %v604_v4, 0.0 }
  0x9a   :  { %v609_v46 = vadd.f32 %v608_v34, %v607_v6  ;;  %v530_v22 = vadd.f32 %v529_v48, %v528_v35 }
  0x9c   :  { %v611_v39 = vadd.f32 %v610_v14, %v609_v46  ;;  %v531_v29 = vrot.slane %v530_v22, 1 }
  0x9e   :  { %v612_v56 = vrot.slane %v611_v39, 4  ;;  %v532_v7 = vadd.f32 %v531_v29, %v530_v22 }
  0xa0   :  { %v613_v5 = vadd.f32 %v612_v56, %v611_v39  ;;  %v623_v33 = vsel %vm622_vm8, %v621_v37, %v532_v7 }
  0xa2   :  { %v614_v36 = vrot.slane %v613_v5, 2 }
  0xa4   :  { %v615_v61 = vadd.f32 %v614_v36, %v613_v5 }
  0xa6   :  { %v616_v41 = vrot.slane %v615_v61, 1 }
  0xa8   :  { %v617_v49 = vadd.f32 %v616_v41, %v615_v61 }
  0xaa   :  { %v625_v57 = vsel %vm624_vm9, %v623_v33, %v617_v49 }
  0xab   :  { %v627_v55 = vsel %vm626_vm10, %v625_v57, 0.0 }
  0xac   :  { %v629_v60 = vadd.f32 %v628_v52, %v627_v55 }
  0xae   :  { %630 = vst.msk [vmem:[%s1368_s6] sm:$0xff] %vm186_vm0, %v629_v60 }
  0xaf   :  { %635 = vsyncpa [#allocation3], 1 }
  0xb0   :  { %636 = vsyncpa [#allocation5], 1 }
  0xb1   :  { %637 = vsyncpa [#allocation8], 1 }

</bundles_post_ra>
